<compile_context>
chip_gen: v5e
topology: v5e:2x2
jax: 0.10.0
libtpu: 0.0.40
codegen_flags: <defaults>
</compile_context>

<pallas_src>
import jax
import jax.numpy as jnp
from jax.experimental import pallas as pl
from jax.experimental.pallas import tpu as pltpu

_LANE = 128
_SUBLANE = 8
# ~4 MiB tiles: per-grid-step overhead (~0.35 us) stays <~10% of the per-tile
# DMA time on every generation, while in+out double-buffered VMEM (~16 MiB
# + slack) fits v5e/v6e/v7x once vmem_limit_bytes is raised explicitly.
_TARGET_TILE_BYTES = 4 * 1024 * 1024
# Aim for >= 2 tiles per TensorCore on v7x (2 TCs) when there is enough data.
_MIN_GRID_STEPS = 4


def _round_up(v, m):
    return ((v + m - 1) // m) * m


def _copy_kernel(x_ref, o_ref):
    # Pure lane/sublane-dense tile copy (DMA-bound; body is just vld/vst).
    o_ref[...] = x_ref[...]


def _compiler_params(block_bytes, semantics):
    # in + out, each double-buffered -> 4x block bytes, plus slack.
    vmem_needed = 4 * block_bytes + (2 << 20)
    return pltpu.CompilerParams(
        dimension_semantics=semantics,
        vmem_limit_bytes=int(max(vmem_needed, 16 << 20)),
    )


def flatten(x):
    """Preferred path: flatten of a contiguous tensor is a free metadata reshape."""
    if x.ndim < 2:
        return x
    return jnp.reshape(x, (x.shape[0], -1))


def flatten_pallas(x, *, _tile_rows=None, _tile_cols=None):
    """Explicit-copy equivalent of torch.flatten(x, 1) for any >=2-D input.

    `_tile_rows` / `_tile_cols` are test-only overrides to exercise ragged
    (partial-block) tails at small shapes; leave None in production.
    """
    if x.ndim < 2:
        return x
    n = x.shape[0]
    d = 1
    for s in x.shape[1:]:
        d *= s
    total = n * d
    if total == 0:
        return jnp.reshape(x, (n, d))
    itemsize = jnp.dtype(x.dtype).itemsize
    cost = pl.CostEstimate(
        flops=0, transcendentals=0, bytes_accessed=2 * total * itemsize
    )

    if total % _LANE == 0:
        # Lane-dense slab path: view the contiguous buffer as (rows, 128) so
        # every vreg is fully populated regardless of N and C*H*W, and tile the
        # row axis so per-step VMEM is fixed and independent of the input.
        rows = total // _LANE
        if _tile_rows is not None:
            tr = _tile_rows
        else:
            tr = max(
                _SUBLANE,
                (_TARGET_TILE_BYTES // (_LANE * itemsize)) // _SUBLANE * _SUBLANE,
            )
            if rows > _MIN_GRID_STEPS * _SUBLANE:
                # Keep at least ~_MIN_GRID_STEPS grid steps so both v7x cores
                # get balanced work (only when there is enough data to split).
                tr = min(tr, _round_up(pl.cdiv(rows, _MIN_GRID_STEPS), _SUBLANE))
        if tr >= rows:
            tr = rows  # full-dim block: always a legal block shape
        grid = (pl.cdiv(rows, tr),)
        block_bytes = tr * _LANE * itemsize

        slab = jnp.reshape(x, (rows, _LANE))  # metadata-only
        out = pl.pallas_call(
            _copy_kernel,
            out_shape=jax.ShapeDtypeStruct((rows, _LANE), x.dtype),
            grid_spec=pltpu.PrefetchScalarGridSpec(
                num_scalar_prefetch=0,
                grid=grid,
                in_specs=[pl.BlockSpec((tr, _LANE), lambda i: (i, 0))],
                out_specs=pl.BlockSpec((tr, _LANE), lambda i: (i, 0)),
            ),
            compiler_params=_compiler_params(block_bytes, ("parallel",)),
            cost_estimate=cost,
        )(slab)
        return jnp.reshape(out, (n, d))  # metadata-only

    # Fallback (total not a multiple of 128): tile the (N, D) view over BOTH
    # axes.  The feature axis is chunked in 128-aligned blocks so block bytes
    # stay bounded (~_TARGET_TILE_BYTES) no matter how large D is; ragged tails
    # on either axis are handled by Pallas partial-block clipping.
    x2d = jnp.reshape(x, (n, d))

    if _tile_cols is not None:
        td = min(_tile_cols, d)
    elif d <= _LANE or d * itemsize * _SUBLANE <= _TARGET_TILE_BYTES:
        td = d  # full feature dim fits comfortably with >=8 rows
    else:
        td = max(
            _LANE,
            (_TARGET_TILE_BYTES // (_SUBLANE * itemsize)) // _LANE * _LANE,
        )

    row_budget = max(1, _TARGET_TILE_BYTES // max(1, td * itemsize))
    if n <= _SUBLANE or row_budget >= n:
        tn = n  # full batch dim -> always legal
    else:
        tn = max(_SUBLANE, (row_budget // _SUBLANE) * _SUBLANE)

    grid = (pl.cdiv(n, tn), pl.cdiv(d, td))
    block_bytes = tn * td * itemsize

    return pl.pallas_call(
        _copy_kernel,
        out_shape=jax.ShapeDtypeStruct((n, d), x.dtype),
        grid_spec=pltpu.PrefetchScalarGridSpec(
            num_scalar_prefetch=0,
            grid=grid,
            in_specs=[pl.BlockSpec((tn, td), lambda i, j: (i, j))],
            out_specs=pl.BlockSpec((tn, td), lambda i, j: (i, j)),
        ),
        compiler_params=_compiler_params(block_bytes, ("parallel", "parallel")),
        cost_estimate=cost,
    )(x2d)


if __name__ == "__main__":
    key = jax.random.PRNGKey(0)

    # 1) Main NCHW case: batch=2, channels=4, spatial=16x16 -> (2, 1024).
    #    Exercises the lane-dense slab path (total % 128 == 0).
    x = jax.random.normal(key, (2, 4, 16, 16), dtype=jnp.float32)
    y = flatten_pallas(x)
    jax.block_until_ready(y)
    y_ref = jnp.reshape(x, (x.shape[0], -1))
    assert y.shape == (2, 4 * 16 * 16), y.shape
    assert y.dtype == x.dtype
    assert jnp.array_equal(y, y_ref)

    # 2) Docstring example (3, 1000, 1, 1) -> (3, 1000); exercises the
    #    fallback path (total not a multiple of 128), single block.
    x2 = jax.random.normal(jax.random.PRNGKey(1), (3, 1000, 1, 1), dtype=jnp.float32)
    y2 = flatten_pallas(x2)
    jax.block_until_ready(y2)
    assert y2.shape == (3, 1000), y2.shape
    assert jnp.array_equal(y2, jnp.reshape(x2, (3, -1)))

    # 3) Slab path with a ragged tail: rows=24, forced 16-row tiles -> last
    #    block is partial (tests Pallas partial-block clipping).
    x3 = jax.random.normal(jax.random.PRNGKey(2), (2, 3, 16, 32), dtype=jnp.float32)
    y3 = flatten_pallas(x3, _tile_rows=16)
    jax.block_until_ready(y3)
    assert y3.shape == (2, 3 * 16 * 32), y3.shape
    assert jnp.array_equal(y3, jnp.reshape(x3, (2, -1)))

    # 4) Fallback path with column tiling and a ragged feature tail
    #    (d=1000, forced 512-wide 128-aligned column blocks).
    y4 = flatten_pallas(x2, _tile_cols=512)
    jax.block_until_ready(y4)
    assert jnp.array_equal(y4, jnp.reshape(x2, (3, -1)))

    # 5) Preferred metadata-only path matches too.
    assert jnp.array_equal(flatten(x), y_ref)

    print("KERNEL_OK")
</pallas_src>

<mosaic_0001>
module attributes {stable_mosaic.version = 11 : i64} {
  func.func @_copy_kernel(%arg0: i32, %arg1: memref<16x128xf32, #tpu.memory_space<vmem>>, %arg2: memref<16x128xf32, #tpu.memory_space<vmem>>) attributes {dimension_semantics = [#tpu.dimension_semantics<parallel>], iteration_bounds = array<i64: 1>, scalar_prefetch = 0 : i64, scratch_operands = 0 : i64, tpu.core_type = #tpu.core_type<tc>, window_params = [{transform_indices = @transform_0, window_bounds = array<i64: 16, 128>}, {transform_indices = @transform_1, window_bounds = array<i64: 16, 128>}]} {
    %c0 = arith.constant 0 : index
    %c0_0 = arith.constant 0 : index
    %0 = vector.load %arg1[%c0, %c0_0] : memref<16x128xf32, #tpu.memory_space<vmem>>, vector<16x128xf32>
    %c0_1 = arith.constant 0 : index
    %c0_2 = arith.constant 0 : index
    %1 = vector.load %arg2[%c0_1, %c0_2] : memref<16x128xf32, #tpu.memory_space<vmem>>, vector<16x128xf32>
    tpu.vector_store %arg2[%c0_1, %c0_2], %0 {strides = array<i32>} : memref<16x128xf32, #tpu.memory_space<vmem>>, vector<16x128xf32>,
    return
  }
  func.func @transform_0(%arg0: i32) -> (i32, i32) {
    %c0_i32 = arith.constant 0 : i32
    %c0_i32_0 = arith.constant 0 : i32
    return %arg0, %c0_i32 : i32, i32
  }
  func.func @transform_1(%arg0: i32) -> (i32, i32) {
    %c0_i32 = arith.constant 0 : i32
    %c0_i32_0 = arith.constant 0 : i32
    return %arg0, %c0_i32 : i32, i32
  }
}

</mosaic_0001>

<bundles_post_ra>
// kernel: tpu_custom_call.1
= control target key start
LH: loop header
LB: loop body
LE: loop exit
PB: predicated region body
PF: predicated region fallthrough
CT: control target
= control target key end

     0   :  { %6 = vsyncpa [#allocation3], 0  ;;  %s124_s0 = inlined_call_operand.hbm [shape: f32[16,128], index: 0, kind: input, shape index: {}]   ;;  %s125_s1 = inlined_call_operand.hbm [shape: f32[16,128], index: 1, kind: output, shape index: {}]  }
   0x1   :  { %7 = vsyncpa [#allocation4], 0  ;;  %s12_s8 = sshll.u32 %s124_s0, 4  ;;  %s104_s9 = smov [#allocation2]   ;;  %s13_s8 = int_to_ptr.hbm [resolvable:$true] %s12_s8 }
   0x2   :  { %s14_s10 = sshll.u32 %s104_s9, 4  ;;  %s105_s11 = smov 128   ;;  %s15_s10 = int_to_ptr.vmem [resolvable:$true] %s14_s10 }
   0x3   :  { %s106_s12 = smov 8  }
   0x4   :  { %20 = dma.hbm_to_vmem [thread:$0]  %s13_s8, 256, %s15_s10, [#allocation3], %s105_s11, %s105_s11, %s106_s12  }
   0x5   :  { %100 = dma.done.wait [#allocation3], 256  }
   0x6   :  { %101 = vsyncadd [#allocation3], 4294967040  ;;  %s107_s13 = smov [#allocation5]   ;;  %s35_s17 = sshll.u32 %s125_s1, 4  ;;  %v25_v0 = vld [vmem:[#allocation2] sm:$0xff]  ;;  %v26_v1 = vld [vmem:[#allocation2 + $0x8] sm:$0xff]  ;;  %s36_s17 = int_to_ptr.hbm [resolvable:$true] %s35_s17 }
   0x7   :  { %s33_s14 = sshll.u32 %s107_s13, 4  ;;  %27 = vst [vmem:[#allocation5] sm:$0xff] %v25_v0  ;;  %s34_s14 = int_to_ptr.vmem [resolvable:$true] %s33_s14 }
   0x8   :  { %28 = vst [vmem:[#allocation5 + $0x8] sm:$0xff] %v26_v1 }
   0x9   :  { %41 = dma.vmem_to_hbm [thread:$0]  %s34_s14, 256, %s36_s17, [#allocation4], %s105_s11, %s105_s11, %s106_s12  }
   0xa   :  { %102 = dma.done.wait [#allocation4], 256  }
   0xb   :  { %103 = vsyncadd [#allocation4], 4294967040 }
   0xc   :  { %46 = vsyncpa [#allocation3], 1 }
   0xd   :  { %47 = vsyncpa [#allocation4], 1 }

</bundles_post_ra>
